<compile_context>
chip_gen: v5e
topology: v5e:2x2
jax: 0.10.0
libtpu: 0.0.40
codegen_flags: <defaults>
</compile_context>

<pallas_src>
import jax
import jax.numpy as jnp
from jax import lax
from jax.experimental import pallas as pl
from jax.experimental.pallas import tpu as pltpu


# ----------------------------------------------------------------------------
# Pallas kernel: fused FFN block for a tile of slots
# ----------------------------------------------------------------------------
def _ffn_kernel(x_ref, w1_ref, b1_ref, w2_ref, b2_ref, g_ref, beta_ref, o_ref):
    """x_ref: [TN, D] slots tile; weights broadcast to every grid step."""
    x = x_ref[...]                                                     # [TN, D]

    # hidden = relu(slots @ W1 + b1)
    h = jnp.dot(x, w1_ref[...], preferred_element_type=jnp.float32) + b1_ref[...]
    h = jnp.maximum(h, 0.0)

    # TODO(synk): hidden_dropout / delta_dropout are identity (eval mode);
    # training-mode dropout would use pltpu.prng_seed + pltpu.prng_random_bits.

    # delta = hidden @ W2 + b2 ; residual add
    delta = jnp.dot(h, w2_ref[...], preferred_element_type=jnp.float32) + b2_ref[...]
    y = x + delta                                                      # [TN, D]

    # LayerNorm over feat_dim (affine, eps=1e-5, biased variance -- PyTorch semantics)
    n = jnp.float32(y.shape[-1])
    mean = jnp.sum(y, axis=-1, keepdims=True) / n
    yc = y - mean
    var = jnp.sum(yc * yc, axis=-1, keepdims=True) / n
    o_ref[...] = (yc * lax.rsqrt(var + 1e-5)) * g_ref[...] + beta_ref[...]


# ----------------------------------------------------------------------------
# Wrapper
# ----------------------------------------------------------------------------
def ffn_forward(slots, params):
    """slots: f32 [1, num_slots_total, feat_dim].

    params: dict with
      w1 [D, H], b1 [H], w2 [H, D], b2 [D], gamma [D], beta [D]
    (w1/w2 are the transposes of the torch nn.Linear weight matrices).
    """
    lead, N, D = slots.shape
    H = params["w1"].shape[1]
    x = slots.reshape(N, D)

    # Pad slot count to a multiple of 8 sublanes (D is already lane-dense).
    Np = ((N + 7) // 8) * 8
    if Np != N:
        x = jnp.pad(x, ((0, Np - N), (0, 0)))

    # >= 2 parallel slot blocks so both v7x TensorCores get work; 1 otherwise.
    if Np >= 16 and (Np // 2) % 8 == 0:
        tn = Np // 2
    else:
        tn = Np
    grid = (Np // tn,)

    out = pl.pallas_call(
        _ffn_kernel,
        out_shape=jax.ShapeDtypeStruct((Np, D), jnp.float32),
        grid=grid,
        in_specs=[
            pl.BlockSpec((tn, D), lambda i: (i, 0)),   # slots tile
            pl.BlockSpec((D, H), lambda i: (0, 0)),    # W1
            pl.BlockSpec((1, H), lambda i: (0, 0)),    # b1
            pl.BlockSpec((H, D), lambda i: (0, 0)),    # W2
            pl.BlockSpec((1, D), lambda i: (0, 0)),    # b2
            pl.BlockSpec((1, D), lambda i: (0, 0)),    # gamma
            pl.BlockSpec((1, D), lambda i: (0, 0)),    # beta
        ],
        out_specs=pl.BlockSpec((tn, D), lambda i: (i, 0)),
        compiler_params=pltpu.CompilerParams(dimension_semantics=("parallel",)),
    )(
        x,
        params["w1"],
        params["b1"].reshape(1, H),
        params["w2"],
        params["b2"].reshape(1, D),
        params["gamma"].reshape(1, D),
        params["beta"].reshape(1, D),
    )
    return out[:N].reshape(lead, N, D)


def ffn_reference(slots, params):
    """Pure-JAX reference mirroring the PyTorch FFN forward (eval mode)."""
    h = jax.nn.relu(slots @ params["w1"] + params["b1"])
    delta = h @ params["w2"] + params["b2"]
    y = slots + delta
    mean = jnp.mean(y, axis=-1, keepdims=True)
    var = jnp.mean((y - mean) ** 2, axis=-1, keepdims=True)
    return (y - mean) / jnp.sqrt(var + 1e-5) * params["gamma"] + params["beta"]


# ----------------------------------------------------------------------------
if __name__ == "__main__":
    key = jax.random.PRNGKey(0)
    ks = jax.random.split(key, 6)

    feat_dim, hidden_dim = 128, 256     # lane-dense feature / hidden widths
    num_slots_total = 64                # e.g. batch 8 x 8 init slots

    slots = jax.random.normal(ks[0], (1, num_slots_total, feat_dim), jnp.float32)
    params = {
        "w1": jax.random.normal(ks[1], (feat_dim, hidden_dim), jnp.float32) * 0.05,
        "b1": jax.random.normal(ks[2], (hidden_dim,), jnp.float32) * 0.05,
        "w2": jax.random.normal(ks[3], (hidden_dim, feat_dim), jnp.float32) * 0.05,
        "b2": jax.random.normal(ks[4], (feat_dim,), jnp.float32) * 0.05,
        "gamma": 1.0 + 0.1 * jax.random.normal(ks[5], (feat_dim,), jnp.float32),
        "beta": jnp.zeros((feat_dim,), jnp.float32),
    }

    out = jax.jit(ffn_forward)(slots, params)
    out = jax.block_until_ready(out)

    ref = ffn_reference(slots, params)
    assert out.shape == (1, num_slots_total, feat_dim)
    max_err = float(jnp.max(jnp.abs(out - ref)))
    assert max_err < 5e-2, f"mismatch vs reference: max abs err {max_err}"

    print("KERNEL_OK")
</pallas_src>

<mosaic_0001>
module attributes {stable_mosaic.version = 11 : i64} {
  func.func @_ffn_kernel(%arg0: i32, %arg1: memref<32x128xf32, #tpu.memory_space<vmem>>, %arg2: memref<128x256xf32, #tpu.memory_space<vmem>>, %arg3: memref<1x256xf32, #tpu.memory_space<vmem>>, %arg4: memref<256x128xf32, #tpu.memory_space<vmem>>, %arg5: memref<1x128xf32, #tpu.memory_space<vmem>>, %arg6: memref<1x128xf32, #tpu.memory_space<vmem>>, %arg7: memref<1x128xf32, #tpu.memory_space<vmem>>, %arg8: memref<32x128xf32, #tpu.memory_space<vmem>>) attributes {dimension_semantics = [#tpu.dimension_semantics<parallel>], iteration_bounds = array<i64: 2>, scalar_prefetch = 0 : i64, scratch_operands = 0 : i64, tpu.core_type = #tpu.core_type<tc>, window_params = [{transform_indices = @transform_0, window_bounds = array<i64: 32, 128>}, {pipeline_mode = #tpu.pipeline_mode<synchronous>, transform_indices = @transform_1, window_bounds = array<i64: 128, 256>}, {pipeline_mode = #tpu.pipeline_mode<synchronous>, transform_indices = @transform_2, window_bounds = array<i64: 1, 256>}, {pipeline_mode = #tpu.pipeline_mode<synchronous>, transform_indices = @transform_3, window_bounds = array<i64: 256, 128>}, {pipeline_mode = #tpu.pipeline_mode<synchronous>, transform_indices = @transform_4, window_bounds = array<i64: 1, 128>}, {pipeline_mode = #tpu.pipeline_mode<synchronous>, transform_indices = @transform_5, window_bounds = array<i64: 1, 128>}, {pipeline_mode = #tpu.pipeline_mode<synchronous>, transform_indices = @transform_6, window_bounds = array<i64: 1, 128>}, {transform_indices = @transform_7, window_bounds = array<i64: 32, 128>}]} {
    %c0 = arith.constant 0 : index
    %c0_0 = arith.constant 0 : index
    %0 = vector.load %arg1[%c0, %c0_0] : memref<32x128xf32, #tpu.memory_space<vmem>>, vector<32x128xf32>
    %c0_1 = arith.constant 0 : index
    %c0_2 = arith.constant 0 : index
    %1 = vector.load %arg2[%c0_1, %c0_2] : memref<128x256xf32, #tpu.memory_space<vmem>>, vector<128x256xf32>
    %cst = arith.constant dense<0.000000e+00> : vector<32x256xf32>
    %2 = tpu.matmul %0, %1, %cst {dimension_numbers = #tpu.dot_dimension_numbers<[1], [0], [0], [1], [0, 0, 1, 1], [], []>} : vector<32x128xf32>, vector<128x256xf32>, vector<32x256xf32> -> vector<32x256xf32>
    %c0_3 = arith.constant 0 : index
    %c0_4 = arith.constant 0 : index
    %3 = vector.load %arg3[%c0_3, %c0_4] : memref<1x256xf32, #tpu.memory_space<vmem>>, vector<1x256xf32>
    %4 = vector.broadcast %3 : vector<1x256xf32> to vector<32x256xf32>
    %5 = arith.addf %2, %4 : vector<32x256xf32>
    %cst_5 = arith.constant 0.000000e+00 : f32
    %6 = vector.broadcast %cst_5 : f32 to vector<32x256xf32>
    %7 = arith.maximumf %5, %6 : vector<32x256xf32>
    %c0_6 = arith.constant 0 : index
    %c0_7 = arith.constant 0 : index
    %8 = vector.load %arg4[%c0_6, %c0_7] : memref<256x128xf32, #tpu.memory_space<vmem>>, vector<256x128xf32>
    %cst_8 = arith.constant dense<0.000000e+00> : vector<32x128xf32>
    %9 = tpu.matmul %7, %8, %cst_8 {dimension_numbers = #tpu.dot_dimension_numbers<[1], [0], [0], [1], [0, 0, 1, 1], [], []>} : vector<32x256xf32>, vector<256x128xf32>, vector<32x128xf32> -> vector<32x128xf32>
    %c0_9 = arith.constant 0 : index
    %c0_10 = arith.constant 0 : index
    %10 = vector.load %arg5[%c0_9, %c0_10] : memref<1x128xf32, #tpu.memory_space<vmem>>, vector<1x128xf32>
    %11 = vector.broadcast %10 : vector<1x128xf32> to vector<32x128xf32>
    %12 = arith.addf %9, %11 : vector<32x128xf32>
    %13 = arith.addf %0, %12 : vector<32x128xf32>
    %cst_11 = arith.constant dense<0.000000e+00> : vector<32xf32>
    %14 = vector.multi_reduction <add>, %13, %cst_11 [1] : vector<32x128xf32> to vector<32xf32>
    %15 = vector.shape_cast %14 : vector<32xf32> to vector<32x1xf32>
    %cst_12 = arith.constant 1.280000e+02 : f32
    %16 = vector.broadcast %cst_12 : f32 to vector<32x1xf32>
    %17 = arith.divf %15, %16 : vector<32x1xf32>
    %18 = vector.broadcast %17 : vector<32x1xf32> to vector<32x128xf32>
    %19 = arith.subf %13, %18 : vector<32x128xf32>
    %20 = arith.mulf %19, %19 : vector<32x128xf32>
    %cst_13 = arith.constant dense<0.000000e+00> : vector<32xf32>
    %21 = vector.multi_reduction <add>, %20, %cst_13 [1] : vector<32x128xf32> to vector<32xf32>
    %22 = vector.shape_cast %21 : vector<32xf32> to vector<32x1xf32>
    %cst_14 = arith.constant 1.280000e+02 : f32
    %23 = vector.broadcast %cst_14 : f32 to vector<32x1xf32>
    %24 = arith.divf %22, %23 : vector<32x1xf32>
    %cst_15 = arith.constant 9.99999974E-6 : f32
    %25 = vector.broadcast %cst_15 : f32 to vector<32x1xf32>
    %26 = arith.addf %24, %25 : vector<32x1xf32>
    %27 = math.rsqrt %26 : vector<32x1xf32>
    %28 = vector.broadcast %27 : vector<32x1xf32> to vector<32x128xf32>
    %29 = arith.mulf %19, %28 : vector<32x128xf32>
    %c0_16 = arith.constant 0 : index
    %c0_17 = arith.constant 0 : index
    %30 = vector.load %arg6[%c0_16, %c0_17] : memref<1x128xf32, #tpu.memory_space<vmem>>, vector<1x128xf32>
    %31 = vector.broadcast %30 : vector<1x128xf32> to vector<32x128xf32>
    %32 = arith.mulf %29, %31 : vector<32x128xf32>
    %c0_18 = arith.constant 0 : index
    %c0_19 = arith.constant 0 : index
    %33 = vector.load %arg7[%c0_18, %c0_19] : memref<1x128xf32, #tpu.memory_space<vmem>>, vector<1x128xf32>
    %34 = vector.broadcast %33 : vector<1x128xf32> to vector<32x128xf32>
    %35 = arith.addf %32, %34 : vector<32x128xf32>
    %c0_20 = arith.constant 0 : index
    %c0_21 = arith.constant 0 : index
    %36 = vector.load %arg8[%c0_20, %c0_21] : memref<32x128xf32, #tpu.memory_space<vmem>>, vector<32x128xf32>
    tpu.vector_store %arg8[%c0_20, %c0_21], %35 {strides = array<i32>} : memref<32x128xf32, #tpu.memory_space<vmem>>, vector<32x128xf32>,
    return
  }
  func.func @transform_0(%arg0: i32) -> (i32, i32) {
    %c0_i32 = arith.constant 0 : i32
    %c0_i32_0 = arith.constant 0 : i32
    return %arg0, %c0_i32 : i32, i32
  }
  func.func @transform_1(%arg0: i32) -> (i32, i32) {
    %c0_i32 = arith.constant 0 : i32
    %c0_i32_0 = arith.constant 0 : i32
    %c0_i32_1 = arith.constant 0 : i32
    return %c0_i32, %c0_i32_0 : i32, i32
  }
  func.func @transform_2(%arg0: i32) -> (i32, i32) {
    %c0_i32 = arith.constant 0 : i32
    %c0_i32_0 = arith.constant 0 : i32
    %c0_i32_1 = arith.constant 0 : i32
    return %c0_i32, %c0_i32_0 : i32, i32
  }
  func.func @transform_3(%arg0: i32) -> (i32, i32) {
    %c0_i32 = arith.constant 0 : i32
    %c0_i32_0 = arith.constant 0 : i32
    %c0_i32_1 = arith.constant 0 : i32
    return %c0_i32, %c0_i32_0 : i32, i32
  }
  func.func @transform_4(%arg0: i32) -> (i32, i32) {
    %c0_i32 = arith.constant 0 : i32
    %c0_i32_0 = arith.constant 0 : i32
    %c0_i32_1 = arith.constant 0 : i32
    return %c0_i32, %c0_i32_0 : i32, i32
  }
  func.func @transform_5(%arg0: i32) -> (i32, i32) {
    %c0_i32 = arith.constant 0 : i32
    %c0_i32_0 = arith.constant 0 : i32
    %c0_i32_1 = arith.constant 0 : i32
    return %c0_i32, %c0_i32_0 : i32, i32
  }
  func.func @transform_6(%arg0: i32) -> (i32, i32) {
    %c0_i32 = arith.constant 0 : i32
    %c0_i32_0 = arith.constant 0 : i32
    %c0_i32_1 = arith.constant 0 : i32
    return %c0_i32, %c0_i32_0 : i32, i32
  }
  func.func @transform_7(%arg0: i32) -> (i32, i32) {
    %c0_i32 = arith.constant 0 : i32
    %c0_i32_0 = arith.constant 0 : i32
    return %arg0, %c0_i32 : i32, i32
  }
}

</mosaic_0001>

<bundles_post_ra>
// kernel: ffn_forward.1
= control target key start
LH: loop header
LB: loop body
LE: loop exit
PB: predicated region body
PF: predicated region fallthrough
CT: control target
= control target key end

     0   :  { %s1279_s0 = inlined_call_operand.hbm [shape: f32[64,128], index: 0, kind: input, shape index: {}]   ;;  %s1280_s1 = inlined_call_operand.hbm [shape: f32[128,256], index: 1, kind: input, shape index: {}]   ;;  %s1281_s2 = inlined_call_operand.vmem [shape: f32[1,256], index: 2, kind: input, shape index: {}]   ;;  %s1282_s3 = inlined_call_operand.hbm [shape: f32[256,128], index: 3, kind: input, shape index: {}]   ;;  %s1283_s4 = inlined_call_operand.vmem [shape: f32[1,128], index: 4, kind: input, shape index: {}]   ;;  %s1284_s5 = inlined_call_operand.vmem [shape: f32[1,128], index: 5, kind: input, shape index: {}]   ;;  %s1285_s6 = inlined_call_operand.vmem [shape: f32[1,128], index: 6, kind: input, shape index: {}]   ;;  %s1286_s7 = inlined_call_operand.hbm [shape: f32[64,128], index: 7, kind: output, shape index: {}]  }
   0x1   :  { %1289 = sst [smem:[#allocation12_spill]] %s1280_s1 }
   0x2   :  { %12 = vsyncpa [#allocation3], 0 }
   0x3   :  { %14 = vsyncpa [#allocation3 + $0x1], 0 }
   0x4   :  { %15 = vsyncpa [#allocation6], 0 }
   0x5   :  { %16 = vsyncpa [#allocation4], 0 }
   0x6   :  { %18 = vsyncpa [#allocation4 + $0x1], 0  ;;  %s1073_s24 = smov 0   ;;  %s1075_s25 = smov 0  }
   0x7   :  { %s1077_s26 = smov 0   ;;  %s1079_s27 = smov 0  }
   0x8 LB: > { %s1094_s28 = sadd.s32 4294967295, %s1022_s27   ;;  %s755_s29 = sadd.s32 4294967294, %s1022_s27   ;;  %s1022_s27 = sphi %s1079_s27, %s1302_s27   ;;  %s1018_s26 = sphi %s1077_s26, %s1301_s26   ;;  %s1014_s25 = sphi %s1075_s25, %s1300_s25   ;;  %s1010_s24 = sphi %s1073_s24, %s1299_s24  }
   0x9   : > { %p44_p0 = scmp.ne.s32.totalorder %s1014_s25, %s1010_s24  ;;  %p45_p1 = scmp.eq.s32.totalorder %s1094_s28, 0 }
   0xa   : > { %p194_p2 = scmp.eq.s32.totalorder %s1094_s28, 1  ;;  %p200_p3 = scmp.eq.s32.totalorder %s755_s29, 1 }
   0xb   : > { %p1103_p4 = por %p45_p1, %p44_p0  ;;  %p756_p5 = scmp.ge.s32.totalorder %s1022_s27, 1 }
   0xc   : > { %p1108_p6 = por %p200_p3, %p44_p0  ;;  %p207_p7 = scmp.lt.s32.totalorder %s1022_s27, 3 }
   0xd   : > { %s1292_s1 = sld [smem:[#allocation12_spill]]  ;;  %s1024_s13 = smov [#allocation5]  }
   0xe   : > { %p1116_p8 = pnand %p756_p5, %p207_p7  ;;  %s220_s14 = sshll.u32 %s1024_s13, 4  ;;  %s221_s14 = int_to_ptr.vmem [resolvable:$true] %s220_s14 }
   0xf   : > { %s235_s17 = sshll.u32 %s1282_s3, 4  ;;  %s1025_s18 = smov 256   ;;  %s236_s17 = int_to_ptr.hbm [resolvable:$true] %s235_s17 }
  0x10   : > { %p787_p9 = pneg %p1116_p8  ;;  %s1026_s19 = smov 16  }
  0x11   : > { %s1027_s20 = smov [#allocation7]   ;;  %s1287_s22 = smov 128  }
  0x12   : > { %p788_p10 = pnand %p787_p9, %p45_p1  ;;  %s237_s21 = sshll.u32 %s1027_s20, 4  ;;  %s238_s21 = int_to_ptr.vmem [resolvable:$true] %s237_s21 }
  0x13   : > { %s218_s11 = sshll.u32 %s1292_s1, 4  ;;  %s1288_s23 = smov 8   ;;  %s219_s11 = int_to_ptr.hbm [resolvable:$true] %s218_s11 }
  0x14   : > { %790 = dma.hbm_to_vmem [thread:$0]  (!%p788_p10), %s219_s11, 4096, %s221_s14, [#allocation6], %s1025_s18, %s1025_s18, %s1026_s19  }
  0x15   : > { %793 = dma.hbm_to_vmem [thread:$0]  (!%p788_p10), %s236_s17, 4096, %s238_s21, [#allocation6], %s1287_s22, %s1287_s22, %s1288_s23  }
  0x16   : > { %s1132_s29 = sadd.s32 1, %s1022_s27   ;;  %s31_s10 = sadd.s32 1, %s1018_s26 }
  0x17   : > { %s28_s9 = ssub.s32 %s1022_s27, %s1132_s29  ;;  %p38_p13 = scmp.ne.s32.totalorder %s1018_s26, %s1014_s25 }
  0x18   : > { %p29_p12 = scmp.eq.s32.totalorder %s28_s9, 0  ;;  %p39_p0 = scmp.eq.s32.totalorder %s1022_s27, 0 }
  0x19   : > { %p1145_p5 = por %p194_p2, %p38_p13  ;;  %p804_p7 = scmp.lt.s32.totalorder %s1022_s27, 2 }
  0x1a   : > { %s1141_s11 = scalar_select %p29_p12, %s1018_s26, %s31_s10  }
  0x1b   : > { %p40_p3 = por %p39_p0, %p38_p13  ;;  %s260_s14 = sand.u32 1, %s1018_s26  }
  0x1c   : > { %s760_s15 = sshll.u32 %s260_s14, 5  ;;  %s773_s16 = sshll.u32 %s1022_s27, 5 }
  0x1d   : > { %s269_s19 = scalar_lea.hbm %s1279_s0, %s773_s16  ;;  %s264_s20 = scalar_lea.vmem [#allocation2], %s760_s15 }
  0x1e   : > { %s272_s21 = sshll.u32 %s264_s20, 4  ;;  %s270_s9 = sshll.u32 %s269_s19, 4  ;;  %s273_s21 = int_to_ptr.vmem [resolvable:$true] %s272_s21  ;;  %s271_s9 = int_to_ptr.hbm [resolvable:$true] %s270_s9 }
  0x1f   : > { %p1155_p9 = pnand %p804_p7, %p40_p3  ;;  %s261_s22 = scalar_lea.sflag [#allocation3], %s260_s14 }
  0x20   : > { %s922_s23 = sshra.s32 %s271_s9, 4  ;;  %s929_s17 = scalar_lea.hbm %s1279_s0, 64  ;;  %s923_s23 = int_to_ptr.hbm [resolvable:$true] %s922_s23 }
  0x21   : > { %s924_s1 = scalar_lea.hbm %s923_s23, 32  ;;  %p926_p10 = pneg %p1155_p9 }
  0x22   : > { %p925_p2 = scmp.ne.s32.totalorder %s923_s23, %s924_s1  ;;  %p930_p0 = scmp.lt.s32.totalorder %s923_s23, %s1279_s0 }
  0x23   : > { %p931_p3 = scmp.lt.s32.totalorder %s929_s17, %s924_s1 }
  0x24   : > { %p927_p12 = pnand %p926_p10, %p925_p2 }
  0x25   : > { %p932_p7 = por %p931_p3, %p930_p0 }
  0x26   : > { %p928_p13 = pneg %p927_p12 }
  0x28   : > { %p933_p11 = pnand %p932_p7, %p928_p13 }
  0x2a   : > { %936 = shalt.err (!%p933_p11)
}
  0x2b   : > { %s1296_s14 = smov 8   ;;  %s1297_s20 = smov 128  }
  0x2c   : > { %797 = dma.hbm_to_vmem [thread:$0]  (!%p1155_p9), %s271_s9, 512, %s273_s21, %s261_s22, %s1297_s20, %s1297_s20, %s1296_s14  }
  0x2d   : > { %284 = sbr.rel (%p1116_p8) target bundleno = 647 (0x287), region = 48  ;;  %s1175_s16 = sand.u32 (!%p1116_p8), 1, %s1014_s25  }
  0x2e   : > { %s764_s1 = sshll.u32 (!%p1116_p8), %s1175_s16, 5  ;;  %s287_s23 = scalar_lea.sflag (!%p1116_p8), [#allocation3], %s1175_s16 }
  0x2f   : > { %s1181_s15 = scalar_lea.vmem (!%p1116_p8), [#allocation2], %s764_s1 }
  0x32   : > { %997 = dma.done.wait (%p1103_p4), %s287_s23, 512  }
  0x33   : > { %999 = vsyncadd (%p1103_p4), %s287_s23, 4294966784 }
  0x34   : > { %1001 = dma.done.wait (%p45_p1), [#allocation6], 8192  }
  0x35   : > { %1003 = vsyncadd (%p45_p1), [#allocation6], 4294959104  ;;  %v368_v0 = vld [vmem:[#allocation5 + $0xf0] sm:$0xff]  ;;  %v366_v1 = vld [vmem:[#allocation5 + $0xe0] sm:$0xff]  ;;  %s1237_s19 = scalar_lea.vmem [#allocation8], %s764_s1  ;;  %s774_s14 = sshll.u32 %s1094_s28, 5 }
  0x36   : > { %v369_v2 = vld [vmem:[#allocation5 + $0xf8] sm:$0xff]  ;;  %376 = vmatpush.msra.mxu0 %v368_v0  ;;  %v367_v3 = vld [vmem:[#allocation5 + $0xe8] sm:$0xff]  ;;  %v364_v4 = vld [vmem:[#allocation5 + $0xd0] sm:$0xff]  ;;  %s659_s23 = scalar_lea.hbm %s1286_s7, %s774_s14  ;;  %s648_s28 = scalar_lea.sflag [#allocation4], %s1175_s16 }
  0x37   : > { %405 = vmatpush.msra.mxu1 %v369_v2  ;;  %v365_v5 = vld [vmem:[#allocation5 + $0xd8] sm:$0xff]  ;;  %v362_v6 = vld [vmem:[#allocation5 + $0xc0] sm:$0xff]  ;;  %v363_v7 = vld [vmem:[#allocation5 + $0xc8] sm:$0xff]  ;;  %s662_s30 = sshll.u32 %s659_s23, 4  ;;  %s972_s10 = scalar_lea.hbm %s1286_s7, 64  ;;  %s663_s30 = int_to_ptr.hbm [resolvable:$true] %s662_s30 }
  0x38   : > { %377 = vmatpush.msra.mxu0 %v366_v1  ;;  %v360_v8 = vld [vmem:[#allocation5 + $0xb0] sm:$0xff]  ;;  %v361_v9 = vld [vmem:[#allocation5 + $0xb8] sm:$0xff]  ;;  %v358_v10 = vld [vmem:[#allocation5 + $0xa0] sm:$0xff]  ;;  %s966_s12 = sshra.s32 %s663_s30, 4  ;;  %s967_s12 = int_to_ptr.hbm [resolvable:$true] %s966_s12 }
  0x39   : > { %406 = vmatpush.msra.mxu1 %v367_v3  ;;  %v359_v11 = vld [vmem:[#allocation5 + $0xa8] sm:$0xff]  ;;  %v356_v12 = vld [vmem:[#allocation5 + $0x90] sm:$0xff]  ;;  %v357_v13 = vld [vmem:[#allocation5 + $0x98] sm:$0xff]  ;;  %s968_s22 = scalar_lea.hbm %s967_s12, 32  ;;  %p973_p11 = scmp.lt.s32.totalorder %s967_s12, %s1286_s7 }
  0x3a   : > { %378 = vmatpush.msra.mxu0 %v364_v4  ;;  %v354_v14 = vld [vmem:[#allocation5 + $0x80] sm:$0xff]  ;;  %v355_v15 = vld [vmem:[#allocation5 + $0x88] sm:$0xff]  ;;  %v352_v16 = vld [vmem:[#allocation5 + $0x70] sm:$0xff]  ;;  %p969_p1 = scmp.ne.s32.totalorder %s967_s12, %s968_s22  ;;  %p974_p9 = scmp.lt.s32.totalorder %s972_s10, %s968_s22 }
  0x3b   : > { %407 = vmatpush.msra.mxu1 %v365_v5  ;;  %v353_v17 = vld [vmem:[#allocation5 + $0x78] sm:$0xff]  ;;  %v350_v18 = vld [vmem:[#allocation5 + $0x60] sm:$0xff]  ;;  %v351_v19 = vld [vmem:[#allocation5 + $0x68] sm:$0xff] }
  0x3c   : > { %379 = vmatpush.msra.mxu0 %v362_v6  ;;  %v348_v20 = vld [vmem:[#allocation5 + $0x50] sm:$0xff]  ;;  %v349_v21 = vld [vmem:[#allocation5 + $0x58] sm:$0xff]  ;;  %v346_v22 = vld [vmem:[#allocation5 + $0x40] sm:$0xff]  ;;  %p970_p4 = pnand %p969_p1, %p1145_p5  ;;  %p975_p2 = por %p974_p9, %p973_p11 }
  0x3d   : > { %408 = vmatpush.msra.mxu1 %v363_v7  ;;  %v347_v23 = vld [vmem:[#allocation5 + $0x48] sm:$0xff]  ;;  %v344_v24 = vld [vmem:[#allocation5 + $0x30] sm:$0xff]  ;;  %v345_v25 = vld [vmem:[#allocation5 + $0x38] sm:$0xff] }
  0x3e   : > { %380 = vmatpush.msra.mxu0 %v360_v8  ;;  %v342_v26 = vld [vmem:[#allocation5 + $0x20] sm:$0xff]  ;;  %v343_v27 = vld [vmem:[#allocation5 + $0x28] sm:$0xff]  ;;  %v457_v28 = vld [vmem:[#allocation7 + $0x78] sm:$0xff]  ;;  %p971_p8 = pneg %p970_p4 }
  0x3f   : > { %409 = vmatpush.msra.mxu1 %v361_v9  ;;  %v473_v29 = vld [vmem:[#allocation7 + $0xf8] sm:$0xff]  ;;  %v456_v30 = vld [vmem:[#allocation7 + $0x70] sm:$0xff]  ;;  %478 = vmatpush.msra.mxu2 %v457_v28  ;;  %v455_v34 = vld [vmem:[#allocation7 + $0x68] sm:$0xff] }
  0x40   : > { %381 = vmatpush.msra.mxu0 %v358_v10  ;;  %v472_v31 = vld [vmem:[#allocation7 + $0xf0] sm:$0xff]  ;;  %v341_v33 = vld [vmem:[#allocation5 + $0x18] sm:$0xff]  ;;  %507 = vmatpush.msra.mxu3 %v473_v29  ;;  %v471_v35 = vld [vmem:[#allocation7 + $0xe8] sm:$0xff]  ;;  %p976_p10 = pnand %p975_p2, %p971_p8 }
  0x41   : > { %410 = vmatpush.msra.mxu1 %v359_v11  ;;  %v340_v32 = vld [vmem:[#allocation5 + $0x10] sm:$0xff]  ;;  %v338_v36 = vld [vmem:[#allocation5] sm:$0xff]  ;;  %v339_v37 = vld [vmem:[#allocation5 + $0x8] sm:$0xff]  ;;  %479 = vmatpush.msra.mxu2 %v456_v30 }
  0x42   : > { %382 = vmatpush.msra.mxu0 %v356_v12  ;;  %508 = vmatpush.msra.mxu3 %v472_v31  ;;  %v1192_v38 = vld [vmem:[%s1181_s15] sm:$0xff]  ;;  %v453_v41 = vld [vmem:[#allocation7 + $0x58] sm:$0xff]  ;;  %v452_v43 = vld [vmem:[#allocation7 + $0x50] sm:$0xff] }
  0x43   : > { %411 = vmatpush.msra.mxu1 %v357_v13  ;;  %480 = vmatpush.msra.mxu2 %v455_v34  ;;  %v454_v39 = vld [vmem:[#allocation7 + $0x60] sm:$0xff]  ;;  %v469_v42 = vld [vmem:[#allocation7 + $0xd8] sm:$0xff]  ;;  %v468_v44 = vld [vmem:[#allocation7 + $0xd0] sm:$0xff] }
  0x44   : > { %383 = vmatpush.msra.mxu0 %v354_v14  ;;  %509 = vmatpush.msra.mxu3 %v471_v35  ;;  %v470_v40 = vld [vmem:[#allocation7 + $0xe0] sm:$0xff]  ;;  %v451_v45 = vld [vmem:[#allocation7 + $0x48] sm:$0xff]  ;;  %v449_v50 = vld [vmem:[#allocation7 + $0x38] sm:$0xff] }
  0x45   : > { %412 = vmatpush.msra.mxu1 %v355_v15  ;;  %481 = vmatpush.msra.mxu2 %v454_v39  ;;  %v467_v46 = vld [vmem:[#allocation7 + $0xc8] sm:$0xff]  ;;  %v450_v48 = vld [vmem:[#allocation7 + $0x40] sm:$0xff]  ;;  %v465_v51 = vld [vmem:[#allocation7 + $0xb8] sm:$0xff] }
  0x46   : > { %384 = vmatpush.msra.mxu0 %v352_v16  ;;  %510 = vmatpush.msra.mxu3 %v470_v40  ;;  %v1197_v47 = vld [vmem:[%s1181_s15 + $0x8] sm:$0xff]  ;;  %v466_v49 = vld [vmem:[#allocation7 + $0xc0] sm:$0xff]  ;;  %v448_v52 = vld [vmem:[#allocation7 + $0x30] sm:$0xff] }
  0x47   : > { %413 = vmatpush.msra.mxu1 %v353_v17  ;;  %482 = vmatpush.msra.mxu2 %v453_v41  ;;  %v464_v53 = vld [vmem:[#allocation7 + $0xb0] sm:$0xff]  ;;  %v447_v54 = vld [vmem:[#allocation7 + $0x28] sm:$0xff]  ;;  %v446_v57 = vld [vmem:[#allocation7 + $0x20] sm:$0xff] }
  0x48   : > { %385 = vmatpush.msra.mxu0 %v350_v18  ;;  %511 = vmatpush.msra.mxu3 %v469_v42  ;;  %v463_v55 = vld [vmem:[#allocation7 + $0xa8] sm:$0xff]  ;;  %v1202_v56 = vld [vmem:[%s1181_s15 + $0x10] sm:$0xff]  ;;  %v462_v58 = vld [vmem:[#allocation7 + $0xa0] sm:$0xff] }
  0x49   : > { %414 = vmatpush.msra.mxu1 %v351_v19  ;;  %483 = vmatpush.msra.mxu2 %v452_v43  ;;  %v445_v59 = vld [vmem:[#allocation7 + $0x18] sm:$0xff]  ;;  %v444_v61 = vld [vmem:[#allocation7 + $0x10] sm:$0xff]  ;;  %v443_v63 = vld [vmem:[#allocation7 + $0x8] sm:$0xff] }
  0x4a   : > { %386 = vmatpush.msra.mxu0 %v348_v20  ;;  %512 = vmatpush.msra.mxu3 %v468_v44  ;;  %v1207_v60 = vld [vmem:[%s1181_s15 + $0x18] sm:$0xff]  ;;  %v460_v0 = vld [vmem:[#allocation7 + $0x90] sm:$0xff]  ;;  %v442_v1 = vld [vmem:[#allocation7] sm:$0xff]  ;;  %s660_s15 = sshll.u32 %s1237_s19, 4  ;;  %s661_s15 = int_to_ptr.vmem [resolvable:$true] %s660_s15 }
  0x4b   : > { %415 = vmatpush.msra.mxu1 %v349_v21  ;;  %484 = vmatpush.msra.mxu2 %v451_v45  ;;  %v461_v62 = vld [vmem:[#allocation7 + $0x98] sm:$0xff]  ;;  %v459_v2 = vld [vmem:[#allocation7 + $0x88] sm:$0xff]  ;;  %v458_v3 = vld [vmem:[#allocation7 + $0x80] sm:$0xff] }
  0x4c   : > { %387 = vmatpush.msra.mxu0 %v346_v22  ;;  %513 = vmatpush.msra.mxu3 %v467_v46  ;;  %v370_v4 = vld [vmem:[%s1281_s2] sm:$0x3] }
  0x4d   : > { %416 = vmatpush.msra.mxu1 %v347_v23  ;;  %485 = vmatpush.msra.mxu2 %v450_v48  ;;  %v372_v5 = vperm.slane %v370_v4, 0  ;;  %v373_v6 = vperm.slane %v370_v4, 1  ;;  %v849_v31 = vld [vmem:[%s1283_s4] ss:$0 sm:$0xff] }
  0x4e   : > { %388 = vmatpush.msra.mxu0 %v344_v24  ;;  %514 = vmatpush.msra.mxu3 %v466_v49 }
  0x4f   : > { %417 = vmatpush.msra.mxu1 %v345_v25  ;;  %486 = vmatpush.msra.mxu2 %v449_v50 }
  0x50   : > { %389 = vmatpush.msra.mxu0 %v342_v26  ;;  %515 = vmatpush.msra.mxu3 %v465_v51 }
  0x51   : > { %418 = vmatpush.msra.mxu1 %v343_v27  ;;  %487 = vmatpush.msra.mxu2 %v448_v52 }
  0x52   : > { %390 = vmatpush.msra.mxu0 %v340_v32  ;;  %516 = vmatpush.msra.mxu3 %v464_v53  ;;  %v1030_v53 = vmov 128.0  }
  0x53   : > { %419 = vmatpush.msra.mxu1 %v341_v33  ;;  %488 = vmatpush.msra.mxu2 %v447_v54  ;;  %852 = vrcp.f32 %v1030_v53 }
  0x54   : > { %391 = vmatpush.msra.mxu0 %v338_v36  ;;  %517 = vmatpush.msra.mxu3 %v463_v55 }
  0x55   : > { %420 = vmatpush.msra.mxu1 %v339_v37  ;;  %392 = vmatmul.f32.vlgmr.msra.gmra.mxu0 %v1192_v38 }
  0x56   : > { %421 = vmatmul.f32.vlgmr.msra.gmra.mxu1 %v1192_v38  ;;  %489 = vmatpush.msra.mxu2 %v446_v57 }
  0x57   : > { %518 = vmatpush.msra.mxu3 %v462_v58 }
  0x58   : > { %490 = vmatpush.msra.mxu2 %v445_v59 }
  0x59   : > { %519 = vmatpush.msra.mxu3 %v461_v62  ;;  %v853_v54 = vpop.eup %852 }
  0x5a   : > { %491 = vmatpush.msra.mxu2 %v444_v61  ;;  %v549_v55 = vmul.f32 128.0, %v853_v54  ;;  %vm553_vm0 = vweird.f32 %v853_v54 }
  0x5b   : > { %520 = vmatpush.msra.mxu3 %v460_v0 }
  0x5c   : > { %492 = vmatpush.msra.mxu2 %v443_v63 }
  0x5d   : > { %395 = vmatmul.f32.gmra.mxu0 %v1197_v47  ;;  %521 = vmatpush.msra.mxu3 %v459_v2 }
  0x5e   : > { %424 = vmatmul.f32.gmra.mxu1 %v1197_v47  ;;  %493 = vmatpush.msra.mxu2 %v442_v1 }
  0x5f   : > { %522 = vmatpush.msra.mxu3 %v458_v3 }
  0x65   : > { %398 = vmatmul.f32.gmra.mxu0 %v1202_v56 }
  0x66   : > { %427 = vmatmul.f32.gmra.mxu1 %v1202_v56 }
  0x6d   : > { %401 = vmatmul.f32.gmra.mxu0 %v1207_v60 }
  0x6e   : > { %430 = vmatmul.f32.gmra.mxu1 %v1207_v60 }
  0xd2   : > { %v393_v7 = vpop.f32.mrf.mxu0 }
  0xd3   : > { %v422_v8 = vpop.f32.mrf.mxu1  ;;  %v394_v9 = vadd.f32 %v393_v7, %v372_v5 }
  0xd4   : > { %v423_v10 = vadd.f32 %v422_v8, %v373_v6 }
  0xd5   : > { %v434_v11 = vmax.f32 %v394_v9, 0.0 }
  0xd6   : > { %v435_v12 = vmax.f32 %v423_v10, 0.0 }
  0xd7   : > { %494 = vmatmul.f32.vlgmr.msra.gmra.mxu2 %v434_v11 }
  0xd8   : > { %523 = vmatmul.f32.vlgmr.msra.gmra.mxu3 %v435_v12 }
  0xda   : > { %v396_v13 = vpop.f32.mrf.mxu0 }
  0xdb   : > { %v425_v14 = vpop.f32.mrf.mxu1  ;;  %v397_v15 = vadd.f32 %v396_v13, %v372_v5 }
  0xdc   : > { %v426_v16 = vadd.f32 %v425_v14, %v373_v6 }
  0xdd   : > { %v436_v17 = vmax.f32 %v397_v15, 0.0 }
  0xde   : > { %v437_v18 = vmax.f32 %v426_v16, 0.0 }
  0xdf   : > { %497 = vmatmul.f32.gmra.mxu2 %v436_v17 }
  0xe0   : > { %526 = vmatmul.f32.gmra.mxu3 %v437_v18 }
  0xe2   : > { %v399_v19 = vpop.f32.mrf.mxu0 }
  0xe3   : > { %v428_v20 = vpop.f32.mrf.mxu1  ;;  %v400_v21 = vadd.f32 %v399_v19, %v372_v5 }
  0xe4   : > { %v429_v22 = vadd.f32 %v428_v20, %v373_v6 }
  0xe5   : > { %v438_v23 = vmax.f32 %v400_v21, 0.0 }
  0xe6   : > { %v439_v24 = vmax.f32 %v429_v22, 0.0 }
  0xe7   : > { %500 = vmatmul.f32.gmra.mxu2 %v438_v23 }
  0xe8   : > { %529 = vmatmul.f32.gmra.mxu3 %v439_v24 }
  0xea   : > { %v402_v25 = vpop.f32.mrf.mxu0 }
  0xeb   : > { %v431_v26 = vpop.f32.mrf.mxu1  ;;  %v403_v27 = vadd.f32 %v402_v25, %v372_v5 }
  0xec   : > { %v432_v28 = vadd.f32 %v431_v26, %v373_v6 }
  0xed   : > { %v440_v29 = vmax.f32 %v403_v27, 0.0 }
  0xee   : > { %v441_v30 = vmax.f32 %v432_v28, 0.0  ;;  %v850_v28 = vld [vmem:[%s1284_s5] ss:$0 sm:$0xff] }
  0xef   : > { %503 = vmatmul.f32.gmra.mxu2 %v440_v29 }
  0xf0   : > { %532 = vmatmul.f32.gmra.mxu3 %v441_v30 }
 0x15a   : > { %v495_v32 = vpop.f32.mrf.mxu2 }
 0x15b   : > { %v524_v33 = vpop.f32.mrf.mxu3  ;;  %v496_v34 = vadd.f32 %v849_v31, %v495_v32 }
 0x15d   : > { %v525_v35 = vadd.f32 %v524_v33, %v496_v34 }
 0x15f   : > { %v536_v36 = vadd.f32 %v525_v35, %v1192_v38 }
 0x161   : > { %540 = vadd.xlane.f32.xlu0 %v536_v36 }
 0x162   : > { %v498_v37 = vpop.f32.mrf.mxu2 }
 0x163   : > { %v527_v39 = vpop.f32.mrf.mxu3  ;;  %v499_v40 = vadd.f32 %v849_v31, %v498_v37 }
 0x165   : > { %v528_v41 = vadd.f32 %v527_v39, %v499_v40 }
 0x167   : > { %v537_v42 = vadd.f32 %v528_v41, %v1197_v47  ;;  %v550_v47 = vsub.f32 1.0, %v549_v55 }
 0x169   : > { %542 = vadd.xlane.f32.xlu0 %v537_v42  ;;  %v551_v57 = vmul.f32 %v853_v54, %v550_v47 }
 0x16a   : > { %v501_v43 = vpop.f32.mrf.mxu2 }
 0x16b   : > { %v530_v44 = vpop.f32.mrf.mxu3  ;;  %v502_v45 = vadd.f32 %v849_v31, %v501_v43  ;;  %v552_v58 = vadd.f32 %v853_v54, %v551_v57 }
 0x16d   : > { %v531_v46 = vadd.f32 %v530_v44, %v502_v45  ;;  %v554_v59 = vsel %vm553_vm0, %v853_v54, %v552_v58 }
 0x16f   : > { %v538_v48 = vadd.f32 %v531_v46, %v1202_v56 }
 0x171   : > { %544 = vadd.xlane.f32.xlu1 %v538_v48 }
 0x172   : > { %v504_v49 = vpop.f32.mrf.mxu2 }
 0x173   : > { %v533_v50 = vpop.f32.mrf.mxu3  ;;  %v505_v51 = vadd.f32 %v849_v31, %v504_v49  ;;  %v851_v31 = vld [vmem:[%s1285_s6] ss:$0 sm:$0xff] }
 0x175   : > { %v534_v52 = vadd.f32 %v533_v50, %v505_v51 }
 0x177   : > { %v539_v38 = vadd.f32 %v534_v52, %v1207_v60 }
 0x179   : > { %546 = vadd.xlane.f32.xlu1 %v539_v38 }
 0x1d4   : > { %v541_v61 = vpop.xlane.xlu0 %540 }
 0x1d5   : > { %v555_v62 = vmul.f32 %v554_v59, %v541_v61 }
 0x1d7   : > { %v559_v56 = vsub.f32 %v536_v36, %v555_v62 }
 0x1d9   : > { %v563_v63 = vmul.f32 %v559_v56, %v559_v56 }
 0x1db   : > { %567 = vadd.xlane.f32.xlu2 %v563_v63 }
 0x1dc   : > { %v543_v0 = vpop.xlane.xlu0 %542 }
 0x1dd   : > { %v556_v1 = vmul.f32 %v554_v59, %v543_v0 }
 0x1df   : > { %v560_v2 = vsub.f32 %v537_v42, %v556_v1 }
 0x1e1   : > { %v564_v3 = vmul.f32 %v560_v2, %v560_v2 }
 0x1e3   : > { %569 = vadd.xlane.f32.xlu2 %v564_v3 }
 0x1e4   : > { %v545_v60 = vpop.xlane.xlu1 %544 }
 0x1e5   : > { %v557_v4 = vmul.f32 %v554_v59, %v545_v60 }
 0x1e7   : > { %v1221_v5 = vsub.f32 %v538_v48, %v557_v4 }
 0x1e9   : > { %v565_v6 = vmul.f32 %v1221_v5, %v1221_v5 }
 0x1eb   : > { %571 = vadd.xlane.f32.xlu0 %v565_v6 }
 0x1ec   : > { %v547_v7 = vpop.xlane.xlu1 %546 }
 0x1ed   : > { %v558_v8 = vmul.f32 %v554_v59, %v547_v7 }
 0x1ef   : > { %v1225_v9 = vsub.f32 %v539_v38, %v558_v8 }
 0x1f1   : > { %v566_v10 = vmul.f32 %v1225_v9, %v1225_v9 }
 0x1f3   : > { %573 = vadd.xlane.f32.xlu1 %v566_v10 }
 0x24e   : > { %v568_v11 = vpop.xlane.xlu2 %567 }
 0x24f   : > { %v575_v12 = vmul.f32 %v568_v11, %v554_v59 }
 0x251   : > { %v579_v13 = vadd.f32 1e-05, %v575_v12 }
 0x253   : > { %854 = vrsqrt.f32 %v579_v13  ;;  %vm589_vm2 = vweird.f32 %v579_v13 }
 0x256   : > { %v570_v14 = vpop.xlane.xlu2 %569 }
 0x257   : > { %v576_v15 = vmul.f32 %v570_v14, %v554_v59 }
 0x259   : > { %v855_v16 = vpop.eup %854  ;;  %v580_v17 = vadd.f32 1e-05, %v576_v15 }
 0x25a   : > { %v584_v18 = vmul.f32 %v855_v16, %v579_v13  ;;  %vm590_vm1 = vweird.f32 %v855_v16 }
 0x25b   : > { %856 = vrsqrt.f32 %v580_v17  ;;  %vm591_vm3 = vmor %vm589_vm2, %vm590_vm1  ;;  %vm599_vm5 = vweird.f32 %v580_v17 }
 0x25c   : > { %v585_v19 = vmul.f32 %v855_v16, %v584_v18 }
 0x25e   : > { %v586_v20 = vmul.f32 0.5, %v585_v19  ;;  %v572_v21 = vpop.xlane.xlu0 %571 }
 0x25f   : > { %v577_v22 = vmul.f32 %v572_v21, %v554_v59 }
 0x260   : > { %v587_v23 = vsub.f32 1.5, %v586_v20 }
 0x261   : > { %v857_v24 = vpop.eup %856  ;;  %v581_v25 = vadd.f32 1e-05, %v577_v22 }
 0x262   : > { %v588_v26 = vmul.f32 %v855_v16, %v587_v23  ;;  %v594_v27 = vmul.f32 %v857_v24, %v580_v17  ;;  %vm600_vm4 = vweird.f32 %v857_v24 }
 0x263   : > { %858 = vrsqrt.f32 %v581_v25  ;;  %vm601_vm6 = vmor %vm599_vm5, %vm600_vm4  ;;  %vm609_vm8 = vweird.f32 %v581_v25 }
 0x264   : > { %v592_v29 = vsel %vm591_vm3, %v855_v16, %v588_v26  ;;  %v595_v30 = vmul.f32 %v857_v24, %v594_v27 }
 0x265   : > { %v623_v32 = vmul.f32 %v592_v29, %v559_v56 }
 0x266   : > { %v596_v33 = vmul.f32 0.5, %v595_v30  ;;  %v574_v34 = vpop.xlane.xlu1 %573 }
 0x267   : > { %v631_v35 = vmul.f32 %v850_v28, %v623_v32  ;;  %v578_v36 = vmul.f32 %v574_v34, %v554_v59 }
 0x268   : > { %v597_v37 = vsub.f32 1.5, %v596_v33 }
 0x269   : > { %v859_v39 = vpop.eup %858  ;;  %v639_v40 = vadd.f32 %v851_v31, %v631_v35  ;;  %v582_v41 = vadd.f32 1e-05, %v578_v36 }
 0x26a   : > { %v598_v42 = vmul.f32 %v857_v24, %v597_v37  ;;  %v604_v43 = vmul.f32 %v859_v39, %v581_v25  ;;  %vm610_vm7 = vweird.f32 %v859_v39 }
 0x26b   : > { %643 = vst [vmem:[%s1237_s19] sm:$0xff] %v639_v40  ;;  %860 = vrsqrt.f32 %v582_v41  ;;  %vm611_vm9 = vmor %vm609_vm8, %vm610_vm7  ;;  %vm619_vm11 = vweird.f32 %v582_v41 }
 0x26c   : > { %v602_v44 = vsel %vm601_vm6, %v857_v24, %v598_v42  ;;  %v605_v45 = vmul.f32 %v859_v39, %v604_v43 }
 0x26d   : > { %v624_v46 = vmul.f32 %v602_v44, %v560_v2 }
 0x26e   : > { %v606_v48 = vmul.f32 0.5, %v605_v45 }
 0x26f   : > { %v632_v49 = vmul.f32 %v850_v28, %v624_v46 }
 0x270   : > { %v607_v50 = vsub.f32 1.5, %v606_v48 }
 0x271   : > { %v861_v51 = vpop.eup %860  ;;  %v640_v52 = vadd.f32 %v851_v31, %v632_v49 }
 0x272   : > { %v608_v38 = vmul.f32 %v859_v39, %v607_v50  ;;  %v614_v53 = vmul.f32 %v861_v51, %v582_v41  ;;  %vm620_vm10 = vweird.f32 %v861_v51 }
 0x273   : > { %644 = vst [vmem:[%s1237_s19 + $0x8] sm:$0xff] %v640_v52  ;;  %vm621_vm12 = vmor %vm619_vm11, %vm620_vm10 }
 0x274   : > { %v612_v54 = vsel %vm611_vm9, %v859_v39, %v608_v38  ;;  %v615_v55 = vmul.f32 %v861_v51, %v614_v53 }
 0x275   : > { %v625_v47 = vmul.f32 %v612_v54, %v1221_v5 }
 0x276   : > { %v616_v57 = vmul.f32 0.5, %v615_v55 }
 0x277   : > { %v633_v58 = vmul.f32 %v850_v28, %v625_v47 }
 0x278   : > { %v617_v59 = vsub.f32 1.5, %v616_v57 }
 0x279   : > { %v641_v61 = vadd.f32 %v851_v31, %v633_v58 }
 0x27a   : > { %v618_v62 = vmul.f32 %v861_v51, %v617_v59 }
 0x27b   : > { %645 = vst [vmem:[%s1237_s19 + $0x10] sm:$0xff] %v641_v61 }
 0x27c   : > { %v622_v56 = vsel %vm621_vm12, %v861_v51, %v618_v62 }
 0x27d   : > { %v626_v63 = vmul.f32 %v622_v56, %v1225_v9 }
 0x27f   : > { %v634_v0 = vmul.f32 %v850_v28, %v626_v63 }
 0x281   : > { %v642_v1 = vadd.f32 %v851_v31, %v634_v0 }
 0x283   : > { %646 = vst [vmem:[%s1237_s19 + $0x18] sm:$0xff] %v642_v1 }
 0x284   : > { %979 = shalt.err (!%p976_p10)
}
 0x285   : > { %s1031_s16 = smov 128   ;;  %s1032_s19 = smov 8  }
 0x286   : > { %785 = dma.vmem_to_hbm [thread:$0]  (%p1145_p5), %s661_s15, 512, %s663_s30, %s648_s28, %s1031_s16, %s1031_s16, %s1032_s19  }
 0x287 PF: > { %s677_s14 = sand.u32 1, %s1010_s24   ;;  %p1298_p12 = scmp.ge.s32.totalorder %s1022_s27, 2 }
 0x288   : > { %s678_s20 = scalar_lea.sflag [#allocation4], %s677_s14 }
 0x289   : > { %p799_p13 = pnand %p1298_p12, %p1108_p6 }
 0x28b   : > { %p800_p0 = pneg %p799_p13 }
 0x28d   : > { %1005 = dma.done.wait (%p800_p0), %s678_s20, 512  }
 0x28e   : > { %1007 = vsyncadd (%p800_p0), %s678_s20, 4294966784  ;;  %p21_p3 = scmp.ge.s32.totalorder %s1132_s29, 4   ;;  %s1299_s24 = smov %s1014_s25 }
 0x28f   : > { %s1300_s25 = smov %s1018_s26  ;;  %s1301_s26 = smov %s1141_s11 }
 0x290   : > { %s1302_s27 = smov %s1132_s29  ;;  %23 = sbr.rel (!%p21_p3) target bundleno = 8 (0x8), region = 101 }
 0x295   :  { %684 = vsyncpa [#allocation3], 1 }
 0x296   :  { %686 = vsyncpa [#allocation3 + $0x1], 1 }
 0x297   :  { %687 = vsyncpa [#allocation6], 1 }
 0x298   :  { %688 = vsyncpa [#allocation4], 1 }
 0x299   :  { %690 = vsyncpa [#allocation4 + $0x1], 1 }

</bundles_post_ra>
